<compile_context>
chip_gen: v5e
topology: v5e:2x2
jax: 0.10.0
libtpu: 0.0.40
codegen_flags: <defaults>
</compile_context>

<pallas_src>
import jax
import jax.numpy as jnp
from jax.experimental import pallas as pl
from jax.experimental.pallas import tpu as pltpu


def _round_up(n: int, m: int) -> int:
    return ((n + m - 1) // m) * m


def _vmem_capacity_bytes() -> int:
    """Physical VMEM of the current TPU generation (conservative fallback)."""
    try:
        return int(pltpu.get_tpu_info().vmem_capacity_bytes)
    except Exception:
        return 64 << 20  # v7x per-TC size: safe lower bound for all gens


def _pick_row_tile(B: int, tb_max: int):
    """Largest multiple-of-8 divisor of B that is <= tb_max.

    Prefers tiles leaving >= 2 grid steps so the 'parallel' row axis can be
    sharded across v7x's two TensorCores.  Returns None when no sublane-
    aligned divisor exists (caller falls back to a one-time row pad).
    """
    cands = [t for t in range(8, min(tb_max, B) + 1, 8) if B % t == 0]
    if not cands:
        return None
    two_step = [t for t in cands if B // t >= 2]
    return max(two_step) if two_step else max(cands)


def res_kernel(x_ref, w_ref, b_ref, o_ref):
    """One row-tile: out = (x @ W + b) + x."""
    x = x_ref[...]                                        # (TB, D), act dtype
    # MXU matmul in the weight dtype (bf16 by default), f32 accumulation.
    y = jnp.dot(x.astype(w_ref.dtype), w_ref[...],
                preferred_element_type=jnp.float32)
    # Bias + residual add in f32 on the VPU, then cast to the output dtype.
    o_ref[...] = (y + b_ref[...] + x.astype(jnp.float32)).astype(o_ref.dtype)


def res_module(x, w, b, *, tb: int = 1024, bf16_matmul: bool = True):
    """out = (x @ w + b) + x as a single gridded Pallas TPU kernel.

    x: (B, D) activations (f32 or bf16; output matches x.dtype).
    w: (D, D) weight.  For best HBM traffic pre-cast it to bf16 once and pass
       the bf16 array (the per-call cast here is only a fallback).
    b: (D,) or (1, D) bias.
    """
    B, D = x.shape
    assert w.shape == (D, D)
    b = jnp.asarray(b, dtype=jnp.float32).reshape(1, D)

    # Weight dtype for the MXU.  Prefer callers passing bf16 directly so the
    # cast is not re-done on every call.
    if bf16_matmul and w.dtype != jnp.bfloat16:
        w = w.astype(jnp.bfloat16)
    w_mm = w

    # ---- Row tiling: avoid padded copies; keep >= 2 grid steps when possible.
    tb_req = max(8, min(int(tb), 1024))
    tb_sel = _pick_row_tile(B, tb_req)
    if tb_sel is None:
        # B not sublane-aligned: one-time row pad (loses the zero-copy alias).
        # TODO(synk): masked tail tile instead of padding for ragged B.
        Bp = _round_up(max(B, 8), 8)
        tb_sel = _pick_row_tile(Bp, tb_req) or Bp
        x_in = jnp.pad(x, ((0, Bp - B), (0, 0)))
    else:
        Bp, x_in = B, x
    grid = (Bp // tb_sel,)

    # ---- VMEM budget (double-buffered pipeline buffers + kernel temporaries).
    w_item = jnp.dtype(w_mm.dtype).itemsize
    x_item = jnp.dtype(x.dtype).itemsize
    tile = tb_sel * D
    vmem_need = (2 * D * D * w_item        # weight (budget 2 pipeline buffers)
                 + 2 * D * 4               # bias buffers
                 + 2 * tile * x_item       # x tiles (double-buffered)
                 + 2 * tile * x_item       # out tiles (double-buffered)
                 + tile * 4                # f32 matmul result
                 + tile * w_item           # x cast to matmul dtype
                 + tile * 4                # f32 residual-add temporary
                 + (2 << 20))              # compiler slack
    usable = _vmem_capacity_bytes() - (12 << 20)   # ~52 MiB usable on v7x
    if vmem_need > usable:
        # TODO(synk): add a K/N-tiled matmul path (f32 scratch accumulator,
        # 'arbitrary' inner K axis) for D too large to keep W resident.
        raise NotImplementedError(
            f"resident-weight path needs {vmem_need>>20} MiB VMEM "
            f"(> {usable>>20} MiB usable); K-tiling not implemented")
    vmem_limit = int(min(usable, max(32 << 20, vmem_need)))

    # ---- Advisory cost estimate so XLA can overlap neighbours.
    cost = pl.CostEstimate(
        flops=2 * Bp * D * D + 2 * Bp * D,
        transcendentals=0,
        bytes_accessed=(Bp * D * x_item          # x in
                        + D * D * w_item + D * 4  # W, b
                        + Bp * D * x_item),       # out
    )

    out = pl.pallas_call(
        res_kernel,
        out_shape=jax.ShapeDtypeStruct((Bp, D), x.dtype),
        grid=grid,
        in_specs=[
            pl.BlockSpec((tb_sel, D), lambda i: (i, 0)),  # x : streamed tiles
            pl.BlockSpec((D, D), lambda i: (0, 0)),       # W : VMEM-resident
            pl.BlockSpec((1, D), lambda i: (0, 0)),       # b : VMEM-resident
        ],
        out_specs=pl.BlockSpec((tb_sel, D), lambda i: (i, 0)),
        input_output_aliases={0: 0},                      # out aliases x
        compiler_params=pltpu.CompilerParams(
            dimension_semantics=("parallel",),            # rows across TCs
            vmem_limit_bytes=vmem_limit,
        ),
        cost_estimate=cost,
    )(x_in, w_mm, b)

    return out[:B] if Bp != B else out


if __name__ == "__main__":
    # Lane-dense hidden (D = 128) and enough rows (B = 1024) to exercise the
    # row grid (tile picker chooses 512-row tiles -> 2 parallel grid steps).
    B, D = 1024, 128

    key = jax.random.PRNGKey(0)
    kx, kw, kb = jax.random.split(key, 3)
    x = jax.random.normal(kx, (B, D), dtype=jnp.float32)
    w = jax.random.normal(kw, (D, D), dtype=jnp.float32) * 0.05
    b = jax.random.normal(kb, (1, D), dtype=jnp.float32) * 0.01

    # Cast the weight to bf16 ONCE (cached parameter), not per call.
    w_bf16 = w.astype(jnp.bfloat16)

    out = jax.block_until_ready(res_module(x, w_bf16, b))
    assert out.shape == (B, D) and out.dtype == x.dtype

    # Matched-precision reference (bf16 operands, f32 accumulation) -> tight.
    ref_mm = jnp.dot(x.astype(jnp.bfloat16), w_bf16,
                     preferred_element_type=jnp.float32)
    ref_matched = ref_mm + b + x
    assert jnp.allclose(out, ref_matched, atol=2e-3, rtol=2e-3), \
        float(jnp.max(jnp.abs(out - ref_matched)))

    # Full-f32 reference: bf16 quantization error stays small at this scale.
    ref_f32 = (x @ w + b) + x
    assert jnp.allclose(out, ref_f32, atol=1e-1, rtol=1e-1)

    print("KERNEL_OK")
</pallas_src>

<mosaic_0001>
module attributes {stable_mosaic.version = 11 : i64} {
  func.func @res_kernel(%arg0: i32, %arg1: memref<512x128xf32, #tpu.memory_space<vmem>>, %arg2: memref<128x128xbf16, #tpu.memory_space<vmem>>, %arg3: memref<1x128xf32, #tpu.memory_space<vmem>>, %arg4: memref<512x128xf32, #tpu.memory_space<vmem>>) attributes {dimension_semantics = [#tpu.dimension_semantics<parallel>], iteration_bounds = array<i64: 2>, scalar_prefetch = 0 : i64, scratch_operands = 0 : i64, tpu.core_type = #tpu.core_type<tc>, window_params = [{transform_indices = @transform_0, window_bounds = array<i64: 512, 128>}, {pipeline_mode = #tpu.pipeline_mode<synchronous>, transform_indices = @transform_1, window_bounds = array<i64: 128, 128>}, {pipeline_mode = #tpu.pipeline_mode<synchronous>, transform_indices = @transform_2, window_bounds = array<i64: 1, 128>}, {transform_indices = @transform_3, window_bounds = array<i64: 512, 128>}]} {
    %c0 = arith.constant 0 : index
    %c0_0 = arith.constant 0 : index
    %0 = vector.load %arg1[%c0, %c0_0] : memref<512x128xf32, #tpu.memory_space<vmem>>, vector<512x128xf32>
    %1 = arith.truncf %0 : vector<512x128xf32> to vector<512x128xbf16>
    %c0_1 = arith.constant 0 : index
    %c0_2 = arith.constant 0 : index
    %2 = vector.load %arg2[%c0_1, %c0_2] : memref<128x128xbf16, #tpu.memory_space<vmem>>, vector<128x128xbf16>
    %cst = arith.constant dense<0.000000e+00> : vector<512x128xf32>
    %3 = tpu.matmul %1, %2, %cst {dimension_numbers = #tpu.dot_dimension_numbers<[1], [0], [0], [1], [0, 0, 1, 1], [], []>} : vector<512x128xbf16>, vector<128x128xbf16>, vector<512x128xf32> -> vector<512x128xf32>
    %c0_3 = arith.constant 0 : index
    %c0_4 = arith.constant 0 : index
    %4 = vector.load %arg3[%c0_3, %c0_4] : memref<1x128xf32, #tpu.memory_space<vmem>>, vector<1x128xf32>
    %5 = vector.broadcast %4 : vector<1x128xf32> to vector<512x128xf32>
    %6 = arith.addf %3, %5 : vector<512x128xf32>
    %7 = arith.addf %6, %0 : vector<512x128xf32>
    %c0_5 = arith.constant 0 : index
    %c0_6 = arith.constant 0 : index
    %8 = vector.load %arg4[%c0_5, %c0_6] : memref<512x128xf32, #tpu.memory_space<vmem>>, vector<512x128xf32>
    tpu.vector_store %arg4[%c0_5, %c0_6], %7 {strides = array<i32>} : memref<512x128xf32, #tpu.memory_space<vmem>>, vector<512x128xf32>,
    return
  }
  func.func @transform_0(%arg0: i32) -> (i32, i32) {
    %c0_i32 = arith.constant 0 : i32
    %c0_i32_0 = arith.constant 0 : i32
    return %arg0, %c0_i32 : i32, i32
  }
  func.func @transform_1(%arg0: i32) -> (i32, i32) {
    %c0_i32 = arith.constant 0 : i32
    %c0_i32_0 = arith.constant 0 : i32
    %c0_i32_1 = arith.constant 0 : i32
    return %c0_i32, %c0_i32_0 : i32, i32
  }
  func.func @transform_2(%arg0: i32) -> (i32, i32) {
    %c0_i32 = arith.constant 0 : i32
    %c0_i32_0 = arith.constant 0 : i32
    %c0_i32_1 = arith.constant 0 : i32
    return %c0_i32, %c0_i32_0 : i32, i32
  }
  func.func @transform_3(%arg0: i32) -> (i32, i32) {
    %c0_i32 = arith.constant 0 : i32
    %c0_i32_0 = arith.constant 0 : i32
    return %arg0, %c0_i32 : i32, i32
  }
}

</mosaic_0001>

<bundles_post_ra>
// kernel: tpu_custom_call.1
= control target key start
LH: loop header
LB: loop body
LE: loop exit
PB: predicated region body
PF: predicated region fallthrough
CT: control target
= control target key end

     0   :  { %8 = vsyncpa [#allocation3], 0  ;;  %s1609_s0 = inlined_call_operand.hbm [shape: f32[1024,128], index: 0, kind: input, shape index: {}, may-alias: {0,3}]   ;;  %s1610_s1 = inlined_call_operand.vmem [shape: bf16[128,128], index: 1, kind: input, shape index: {}]   ;;  %s1611_s2 = inlined_call_operand.vmem [shape: f32[1,128], index: 2, kind: input, shape index: {}]   ;;  %s1612_s3 = inlined_call_operand.hbm [shape: f32[1024,128], index: 3, kind: output, shape index: {}, may-alias: {0,3}]  }
   0x1   :  { %10 = vsyncpa [#allocation3 + $0x1], 0 }
   0x2   :  { %11 = vsyncpa [#allocation4], 0 }
   0x3   :  { %13 = vsyncpa [#allocation4 + $0x1], 0  ;;  %s996_s12 = smov 0   ;;  %s998_s13 = smov 0  }
   0x4   :  { %s1000_s14 = smov 0   ;;  %s1002_s15 = smov 0  }
   0x5 LB: > { %s1017_s16 = sadd.s32 4294967295, %s970_s15   ;;  %s743_s17 = sadd.s32 4294967294, %s970_s15   ;;  %s970_s15 = sphi %s1002_s15, %s1655_s15   ;;  %s966_s14 = sphi %s1000_s14, %s1654_s14   ;;  %s962_s13 = sphi %s998_s13, %s1653_s13   ;;  %s958_s12 = sphi %s996_s12, %s1652_s12  }
   0x6   : > { %s1021_s18 = sadd.s32 1, %s970_s15   ;;  %s26_s19 = sadd.s32 1, %s966_s14 }
   0x7   : > { %s23_s20 = ssub.s32 %s970_s15, %s1021_s18  ;;  %p33_p0 = scmp.ne.s32.totalorder %s966_s14, %s962_s13 }
   0x8   : > { %p24_p1 = scmp.eq.s32.totalorder %s23_s20, 0  ;;  %p34_p2 = scmp.eq.s32.totalorder %s970_s15, 0 }
   0x9   : > { %p39_p3 = scmp.ne.s32.totalorder %s962_s13, %s958_s12  ;;  %p40_p4 = scmp.eq.s32.totalorder %s1017_s16, 0 }
   0xa   : > { %s1033_s21 = scalar_select %p24_p1, %s966_s14, %s26_s19  }
   0xb   : > { %p1035_p5 = por %p34_p2, %p33_p0  ;;  %p1039_p6 = por %p40_p4, %p39_p3 }
   0xc   : > { %p105_p7 = scmp.eq.s32.totalorder %s1017_s16, 1  ;;  %p111_p8 = scmp.eq.s32.totalorder %s743_s17, 1 }
   0xd   : > { %p835_p10 = scmp.lt.s32.totalorder %s970_s15, 2  ;;  %s137_s26 = sand.u32 1, %s966_s14  }
   0xe   : > { %p1046_p11 = por %p105_p7, %p33_p0  ;;  %p1050_p12 = por %p111_p8, %p39_p3 }
   0xf   : > { %s789_s27 = sshll.u32 %s970_s15, 9  ;;  %s746_s28 = sshll.u32 %s137_s26, 9 }
  0x10   : > { %s146_s4 = scalar_lea.hbm %s1609_s0, %s789_s27  ;;  %s141_s6 = scalar_lea.vmem [#allocation2], %s746_s28 }
  0x11   : > { %s147_s5 = sshll.u32 %s146_s4, 4  ;;  %s149_s7 = sshll.u32 %s141_s6, 4  ;;  %s148_s5 = int_to_ptr.hbm [resolvable:$true] %s147_s5  ;;  %s150_s7 = int_to_ptr.vmem [resolvable:$true] %s149_s7 }
  0x12   : > { %p1061_p13 = pnand %p835_p10, %p1035_p5  ;;  %p749_p0 = scmp.ge.s32.totalorder %s970_s15, 1 }
  0x13   : > { %p157_p1 = scmp.lt.s32.totalorder %s970_s15, 3  ;;  %s138_s9 = scalar_lea.sflag [#allocation3], %s137_s26 }
  0x14   : > { %s874_s10 = sshra.s32 %s148_s5, 4  ;;  %p878_p3 = pneg %p1061_p13  ;;  %s875_s10 = int_to_ptr.hbm [resolvable:$true] %s874_s10 }
  0x15   : > { %s876_s11 = scalar_lea.hbm %s875_s10, 512  ;;  %s881_s20 = scalar_lea.hbm %s1609_s0, 1024 }
  0x16   : > { %p877_p2 = scmp.ne.s32.totalorder %s875_s10, %s876_s11  ;;  %p882_p5 = scmp.lt.s32.totalorder %s875_s10, %s1609_s0 }
  0x17   : > { %p883_p8 = scmp.lt.s32.totalorder %s881_s20, %s876_s11 }
  0x18   : > { %p879_p4 = pnand %p878_p3, %p877_p2 }
  0x19   : > { %p884_p10 = por %p883_p8, %p882_p5 }
  0x1a   : > { %p880_p7 = pneg %p879_p4 }
  0x1c   : > { %p885_p9 = pnand %p884_p10, %p880_p7 }
  0x1e   : > { %888 = shalt.err (!%p885_p9)
}
  0x1f   : > { %s972_s26 = smov 128   ;;  %s973_s28 = smov 8  }
  0x20   : > { %830 = dma.hbm_to_vmem [thread:$0]  (!%p1061_p13), %s148_s5, 8192, %s150_s7, %s138_s9, %s972_s26, %s972_s26, %s973_s28  }
  0x21   : > { %p158_p2 = pnand %p749_p0, %p157_p1 }
  0x23   : > { %161 = sbr.rel (%p158_p2) target bundleno = 338 (0x152), region = 32 }
  0x28   : > { %s1082_s29 = sand.u32 1, %s962_s13  }
  0x29   : > { %s750_s30 = sshll.u32 %s1082_s29, 9  ;;  %s164_s4 = scalar_lea.sflag [#allocation3], %s1082_s29 }
  0x2a   : > { %s1088_s6 = scalar_lea.vmem [#allocation2], %s750_s30 }
  0x2b   : > { %949 = dma.done.wait (%p1039_p6), %s164_s4, 8192  }
  0x2c   : > { %951 = vsyncadd (%p1039_p6), %s164_s4, 4294959104  ;;  %v797_v0 = vld [vmem:[%s1610_s1 + $0x38] sm:$0xff]  ;;  %v796_v1 = vld [vmem:[%s1610_s1 + $0x30] sm:$0xff]  ;;  %s1385_s8 = scalar_lea.vmem [#allocation5], %s750_s30  ;;  %s798_s30 = sshll.u32 %s1017_s16, 9 }
  0x2d   : > { %357 = vmatpush.bf16.msra.mxu0 %v797_v0  ;;  %799 = vmatpush.bf16.msra.mxu1 %v797_v0  ;;  %v795_v2 = vld [vmem:[%s1610_s1 + $0x28] sm:$0xff]  ;;  %v794_v3 = vld [vmem:[%s1610_s1 + $0x20] sm:$0xff]  ;;  %v793_v4 = vld [vmem:[%s1610_s1 + $0x18] sm:$0xff]  ;;  %s666_s11 = scalar_lea.hbm %s1612_s3, %s798_s30  ;;  %s667_s16 = sshll.u32 %s1385_s8, 4  ;;  %s668_s16 = int_to_ptr.vmem [resolvable:$true] %s667_s16 }
  0x2e   : > { %800 = vmatpush.bf16.msra.mxu2 %v797_v0  ;;  %801 = vmatpush.bf16.msra.mxu3 %v797_v0  ;;  %v792_v5 = vld [vmem:[%s1610_s1 + $0x10] sm:$0xff]  ;;  %v791_v6 = vld [vmem:[%s1610_s1 + $0x8] sm:$0xff]  ;;  %v790_v7 = vld [vmem:[%s1610_s1] sm:$0xff]  ;;  %s669_s23 = sshll.u32 %s666_s11, 4  ;;  %s655_s17 = scalar_lea.sflag [#allocation4], %s1082_s29  ;;  %s670_s23 = int_to_ptr.hbm [resolvable:$true] %s669_s23 }
  0x2f   : > { %v1119_v8 = vld [vmem:[%s1088_s6] sm:$0xff]  ;;  %v1122_v9 = vld [vmem:[%s1088_s6 + $0x8] sm:$0xff]  ;;  %v1151_v20 = vld [vmem:[%s1088_s6 + $0x10] sm:$0xff]  ;;  %s918_s19 = sshra.s32 %s670_s23, 4  ;;  %s924_s26 = scalar_lea.hbm %s1612_s3, 1024  ;;  %s919_s19 = int_to_ptr.hbm [resolvable:$true] %s918_s19 }
  0x30   : > { %v1125_v10 = vld [vmem:[%s1088_s6 + $0x80] sm:$0xff]  ;;  %v1128_v11 = vld [vmem:[%s1088_s6 + $0x88] sm:$0xff]  ;;  %v257_v16 = vpack.c.bf16 %v1122_v9, %v1119_v8  ;;  %v1154_v21 = vld [vmem:[%s1088_s6 + $0x18] sm:$0xff]  ;;  %s920_s20 = scalar_lea.hbm %s919_s19, 512  ;;  %p925_p0 = scmp.lt.s32.totalorder %s919_s19, %s1612_s3 }
  0x31   : > { %358 = vmatpush.bf16.msra.mxu0 %v796_v1  ;;  %802 = vmatpush.bf16.msra.mxu1 %v796_v1  ;;  %v1131_v12 = vld [vmem:[%s1088_s6 + $0x100] sm:$0xff]  ;;  %v1134_v13 = vld [vmem:[%s1088_s6 + $0x108] sm:$0xff]  ;;  %v265_v17 = vpack.c.bf16 %v1128_v11, %v1125_v10  ;;  %v1157_v22 = vld [vmem:[%s1088_s6 + $0x90] sm:$0xff]  ;;  %v258_v28 = vpack.c.bf16 %v1154_v21, %v1151_v20  ;;  %p921_p6 = scmp.ne.s32.totalorder %s919_s19, %s920_s20  ;;  %p926_p1 = scmp.lt.s32.totalorder %s924_s26, %s920_s20 }
  0x32   : > { %803 = vmatpush.bf16.msra.mxu2 %v796_v1  ;;  %804 = vmatpush.bf16.msra.mxu3 %v796_v1  ;;  %v1137_v14 = vld [vmem:[%s1088_s6 + $0x180] sm:$0xff]  ;;  %v1140_v15 = vld [vmem:[%s1088_s6 + $0x188] sm:$0xff]  ;;  %v273_v18 = vpack.c.bf16 %v1134_v13, %v1131_v12  ;;  %v1160_v23 = vld [vmem:[%s1088_s6 + $0x98] sm:$0xff] }
  0x33   : > { %v281_v19 = vpack.c.bf16 %v1140_v15, %v1137_v14  ;;  %v1163_v24 = vld [vmem:[%s1088_s6 + $0x110] sm:$0xff]  ;;  %v1166_v25 = vld [vmem:[%s1088_s6 + $0x118] sm:$0xff]  ;;  %v266_v29 = vpack.c.bf16 %v1160_v23, %v1157_v22  ;;  %v1183_v32 = vld [vmem:[%s1088_s6 + $0x20] sm:$0xff]  ;;  %p922_p9 = pnand %p921_p6, %p1046_p11  ;;  %p927_p3 = por %p926_p1, %p925_p0 }
  0x34   : > { %v1169_v26 = vld [vmem:[%s1088_s6 + $0x190] sm:$0xff]  ;;  %v1172_v27 = vld [vmem:[%s1088_s6 + $0x198] sm:$0xff]  ;;  %v274_v30 = vpack.c.bf16 %v1166_v25, %v1163_v24  ;;  %v1186_v33 = vld [vmem:[%s1088_s6 + $0x28] sm:$0xff] }
  0x35   : > { %359 = vmatpush.bf16.msra.mxu0 %v795_v2  ;;  %805 = vmatpush.bf16.msra.mxu1 %v795_v2  ;;  %v282_v31 = vpack.c.bf16 %v1172_v27, %v1169_v26  ;;  %v1189_v34 = vld [vmem:[%s1088_s6 + $0xa0] sm:$0xff]  ;;  %v1192_v35 = vld [vmem:[%s1088_s6 + $0xa8] sm:$0xff]  ;;  %v259_v40 = vpack.c.bf16 %v1186_v33, %v1183_v32  ;;  %v1215_v44 = vld [vmem:[%s1088_s6 + $0x30] sm:$0xff]  ;;  %p923_p13 = pneg %p922_p9 }
  0x36   : > { %806 = vmatpush.bf16.msra.mxu2 %v795_v2  ;;  %807 = vmatpush.bf16.msra.mxu3 %v795_v2  ;;  %v1195_v36 = vld [vmem:[%s1088_s6 + $0x120] sm:$0xff]  ;;  %v1198_v37 = vld [vmem:[%s1088_s6 + $0x128] sm:$0xff]  ;;  %v267_v41 = vpack.c.bf16 %v1192_v35, %v1189_v34  ;;  %v1218_v45 = vld [vmem:[%s1088_s6 + $0x38] sm:$0xff] }
  0x37   : > { %v1201_v38 = vld [vmem:[%s1088_s6 + $0x1a0] sm:$0xff]  ;;  %v1204_v39 = vld [vmem:[%s1088_s6 + $0x1a8] sm:$0xff]  ;;  %v275_v42 = vpack.c.bf16 %v1198_v37, %v1195_v36  ;;  %v1221_v46 = vld [vmem:[%s1088_s6 + $0xb0] sm:$0xff]  ;;  %v260_v52 = vpack.c.bf16 %v1218_v45, %v1215_v44  ;;  %p928_p4 = pnand %p927_p3, %p923_p13 }
  0x38   : > { %v283_v43 = vpack.c.bf16 %v1204_v39, %v1201_v38  ;;  %v1224_v47 = vld [vmem:[%s1088_s6 + $0xb8] sm:$0xff]  ;;  %v1227_v48 = vld [vmem:[%s1088_s6 + $0x130] sm:$0xff]  ;;  %v1247_v56 = vld [vmem:[%s1088_s6 + $0x40] sm:$0xff] }
  0x39   : > { %360 = vmatpush.bf16.msra.mxu0 %v794_v3  ;;  %808 = vmatpush.bf16.msra.mxu1 %v794_v3  ;;  %v1230_v49 = vld [vmem:[%s1088_s6 + $0x138] sm:$0xff]  ;;  %v1233_v50 = vld [vmem:[%s1088_s6 + $0x1b0] sm:$0xff]  ;;  %v268_v53 = vpack.c.bf16 %v1224_v47, %v1221_v46  ;;  %v1250_v57 = vld [vmem:[%s1088_s6 + $0x48] sm:$0xff] }
  0x3a   : > { %809 = vmatpush.bf16.msra.mxu2 %v794_v3  ;;  %810 = vmatpush.bf16.msra.mxu3 %v794_v3  ;;  %v1236_v51 = vld [vmem:[%s1088_s6 + $0x1b8] sm:$0xff]  ;;  %v276_v54 = vpack.c.bf16 %v1230_v49, %v1227_v48  ;;  %v1253_v58 = vld [vmem:[%s1088_s6 + $0xc0] sm:$0xff]  ;;  %v1256_v59 = vld [vmem:[%s1088_s6 + $0xc8] sm:$0xff]  ;;  %v261_v0 = vpack.c.bf16 %v1250_v57, %v1247_v56 }
  0x3b   : > { %v284_v55 = vpack.c.bf16 %v1236_v51, %v1233_v50  ;;  %v1259_v60 = vld [vmem:[%s1088_s6 + $0x140] sm:$0xff]  ;;  %v1262_v61 = vld [vmem:[%s1088_s6 + $0x148] sm:$0xff]  ;;  %v269_v1 = vpack.c.bf16 %v1256_v59, %v1253_v58 }
  0x3c   : > { %v1265_v62 = vld [vmem:[%s1088_s6 + $0x1c0] sm:$0xff]  ;;  %v1268_v63 = vld [vmem:[%s1088_s6 + $0x1c8] sm:$0xff]  ;;  %v277_v2 = vpack.c.bf16 %v1262_v61, %v1259_v60 }
  0x3d   : > { %361 = vmatpush.bf16.msra.mxu0 %v793_v4  ;;  %811 = vmatpush.bf16.msra.mxu1 %v793_v4  ;;  %v285_v3 = vpack.c.bf16 %v1268_v63, %v1265_v62 }
  0x3e   : > { %812 = vmatpush.bf16.msra.mxu2 %v793_v4  ;;  %813 = vmatpush.bf16.msra.mxu3 %v793_v4  ;;  %v1279_v4 = vld [vmem:[%s1088_s6 + $0x50] sm:$0xff] }
  0x41   : > { %362 = vmatpush.bf16.msra.mxu0 %v792_v5  ;;  %814 = vmatpush.bf16.msra.mxu1 %v792_v5 }
  0x42   : > { %815 = vmatpush.bf16.msra.mxu2 %v792_v5  ;;  %816 = vmatpush.bf16.msra.mxu3 %v792_v5  ;;  %v1282_v5 = vld [vmem:[%s1088_s6 + $0x58] sm:$0xff] }
  0x45   : > { %363 = vmatpush.bf16.msra.mxu0 %v791_v6  ;;  %817 = vmatpush.bf16.msra.mxu1 %v791_v6 }
  0x46   : > { %818 = vmatpush.bf16.msra.mxu2 %v791_v6  ;;  %819 = vmatpush.bf16.msra.mxu3 %v791_v6  ;;  %v1285_v6 = vld [vmem:[%s1088_s6 + $0xd0] sm:$0xff] }
  0x49   : > { %364 = vmatpush.bf16.msra.mxu0 %v790_v7  ;;  %820 = vmatpush.bf16.msra.mxu1 %v790_v7 }
  0x4a   : > { %821 = vmatpush.bf16.msra.mxu2 %v790_v7  ;;  %822 = vmatpush.bf16.msra.mxu3 %v790_v7  ;;  %v1288_v7 = vld [vmem:[%s1088_s6 + $0xd8] sm:$0xff] }
  0x4c   : > { %365 = vmatmul.bf16.vlgmr.msra.gmra.mxu0 %v257_v16  ;;  %405 = vmatmul.bf16.vlgmr.msra.gmra.mxu1 %v265_v17  ;;  %v1291_v16 = vld [vmem:[%s1088_s6 + $0x150] sm:$0xff]  ;;  %v1294_v17 = vld [vmem:[%s1088_s6 + $0x158] sm:$0xff] }
  0x4d   : > { %445 = vmatmul.bf16.vlgmr.msra.gmra.mxu2 %v273_v18  ;;  %485 = vmatmul.bf16.vlgmr.msra.gmra.mxu3 %v281_v19  ;;  %v1297_v18 = vld [vmem:[%s1088_s6 + $0x1d0] sm:$0xff]  ;;  %v1300_v19 = vld [vmem:[%s1088_s6 + $0x1d8] sm:$0xff] }
  0x5c   : > { %370 = vmatmul.bf16.gmra.mxu0 %v258_v28  ;;  %410 = vmatmul.bf16.gmra.mxu1 %v266_v29  ;;  %v262_v28 = vpack.c.bf16 %v1282_v5, %v1279_v4  ;;  %v270_v29 = vpack.c.bf16 %v1288_v7, %v1285_v6 }
  0x5d   : > { %450 = vmatmul.bf16.gmra.mxu2 %v274_v30  ;;  %490 = vmatmul.bf16.gmra.mxu3 %v282_v31  ;;  %v278_v30 = vpack.c.bf16 %v1294_v17, %v1291_v16  ;;  %v286_v31 = vpack.c.bf16 %v1300_v19, %v1297_v18 }
  0x6c   : > { %375 = vmatmul.bf16.gmra.mxu0 %v259_v40  ;;  %415 = vmatmul.bf16.gmra.mxu1 %v267_v41  ;;  %v1311_v40 = vld [vmem:[%s1088_s6 + $0x60] sm:$0xff]  ;;  %v1314_v41 = vld [vmem:[%s1088_s6 + $0x68] sm:$0xff] }
  0x6d   : > { %455 = vmatmul.bf16.gmra.mxu2 %v275_v42  ;;  %495 = vmatmul.bf16.gmra.mxu3 %v283_v43  ;;  %1629 = vst [vmem:[#allocation8_spill] sm:$0xff] %v1314_v41  ;;  %v1317_v42 = vld [vmem:[%s1088_s6 + $0xe0] sm:$0xff]  ;;  %v1320_v43 = vld [vmem:[%s1088_s6 + $0xe8] sm:$0xff] }
  0x6e   : > { %1630 = vst [vmem:[#allocation9_spill] sm:$0xff] %v1320_v43 }
  0x7c   : > { %380 = vmatmul.bf16.gmra.mxu0 %v260_v52  ;;  %420 = vmatmul.bf16.gmra.mxu1 %v268_v53  ;;  %v1323_v52 = vld [vmem:[%s1088_s6 + $0x160] sm:$0xff]  ;;  %v1326_v53 = vld [vmem:[%s1088_s6 + $0x168] sm:$0xff] }
  0x7d   : > { %460 = vmatmul.bf16.gmra.mxu2 %v276_v54  ;;  %500 = vmatmul.bf16.gmra.mxu3 %v284_v55  ;;  %1631 = vst [vmem:[#allocation10_spill] sm:$0xff] %v1323_v52  ;;  %v1329_v54 = vld [vmem:[%s1088_s6 + $0x1e0] sm:$0xff]  ;;  %v1332_v55 = vld [vmem:[%s1088_s6 + $0x1e8] sm:$0xff] }
  0x7e   : > { %1632 = vst [vmem:[#allocation11_spill] sm:$0xff] %v1326_v53 }
  0x7f   : > { %1633 = vst [vmem:[#allocation12_spill] sm:$0xff] %v1329_v54 }
  0x80   : > { %1634 = vst [vmem:[#allocation13_spill] sm:$0xff] %v1332_v55 }
  0x8c   : > { %385 = vmatmul.bf16.gmra.mxu0 %v261_v0  ;;  %425 = vmatmul.bf16.gmra.mxu1 %v269_v1  ;;  %v263_v0 = vpack.c.bf16 %v1314_v41, %v1311_v40  ;;  %v271_v1 = vpack.c.bf16 %v1320_v43, %v1317_v42  ;;  %v1355_v41 = vld [vmem:[%s1088_s6 + $0x170] sm:$0xff]  ;;  %v1358_v43 = vld [vmem:[%s1088_s6 + $0x178] sm:$0xff] }
  0x8d   : > { %465 = vmatmul.bf16.gmra.mxu2 %v277_v2  ;;  %505 = vmatmul.bf16.gmra.mxu3 %v285_v3  ;;  %v279_v2 = vpack.c.bf16 %v1326_v53, %v1323_v52  ;;  %v287_v3 = vpack.c.bf16 %v1332_v55, %v1329_v54  ;;  %1638 = vst [vmem:[#allocation17_spill] sm:$0xff] %v1355_v41  ;;  %v1361_v53 = vld [vmem:[%s1088_s6 + $0x1f0] sm:$0xff]  ;;  %v1364_v52 = vld [vmem:[%s1088_s6 + $0x1f8] sm:$0xff]  ;;  %v1377_v55 = vld [vmem:[%s1611_s2] ss:$0 sm:$0xff] }
  0x8e   : > { %1639 = vst [vmem:[#allocation18_spill] sm:$0xff] %v1358_v43 }
  0x9c   : > { %390 = vmatmul.bf16.gmra.mxu0 %v262_v28  ;;  %430 = vmatmul.bf16.gmra.mxu1 %v270_v29  ;;  %v1343_v28 = vld [vmem:[%s1088_s6 + $0x70] sm:$0xff]  ;;  %v1346_v29 = vld [vmem:[%s1088_s6 + $0x78] sm:$0xff] }
  0x9d   : > { %470 = vmatmul.bf16.gmra.mxu2 %v278_v30  ;;  %510 = vmatmul.bf16.gmra.mxu3 %v286_v31  ;;  %1635 = vst [vmem:[#allocation14_spill] sm:$0xff] %v1343_v28  ;;  %v1349_v30 = vld [vmem:[%s1088_s6 + $0xf0] sm:$0xff]  ;;  %v1352_v31 = vld [vmem:[%s1088_s6 + $0xf8] sm:$0xff] }
  0x9e   : > { %1636 = vst [vmem:[#allocation15_spill] sm:$0xff] %v1346_v29 }
  0x9f   : > { %1637 = vst [vmem:[#allocation16_spill] sm:$0xff] %v1352_v31 }
  0xac   : > { %395 = vmatmul.bf16.gmra.mxu0 %v263_v0  ;;  %435 = vmatmul.bf16.gmra.mxu1 %v271_v1  ;;  %v264_v0 = vpack.c.bf16 %v1346_v29, %v1343_v28  ;;  %v272_v1 = vpack.c.bf16 %v1352_v31, %v1349_v30 }
  0xad   : > { %475 = vmatmul.bf16.gmra.mxu2 %v279_v2  ;;  %515 = vmatmul.bf16.gmra.mxu3 %v287_v3  ;;  %v280_v2 = vpack.c.bf16 %v1358_v43, %v1355_v41  ;;  %v288_v3 = vpack.c.bf16 %v1364_v52, %v1361_v53 }
  0xbc   : > { %400 = vmatmul.bf16.gmra.mxu0 %v264_v0  ;;  %440 = vmatmul.bf16.gmra.mxu1 %v272_v1 }
  0xbd   : > { %480 = vmatmul.bf16.gmra.mxu2 %v280_v2  ;;  %520 = vmatmul.bf16.gmra.mxu3 %v288_v3 }
  0xc9   : > { %v366_v54 = vpop.f32.mrf.mxu0  ;;  %v406_v29 = vpop.f32.mrf.mxu1 }
  0xca   : > { %v367_v28 = vadd.f32 %v1377_v55, %v366_v54  ;;  %v407_v31 = vadd.f32 %v1377_v55, %v406_v29 }
  0xcc   : > { %v526_v43 = vadd.f32 %v367_v28, %v1119_v8  ;;  %v542_v41 = vadd.f32 %v407_v31, %v1125_v10 }
  0xce   : > { %590 = vst [vmem:[%s1385_s8] sm:$0xff] %v526_v43 }
  0xcf   : > { %606 = vst [vmem:[%s1385_s8 + $0x80] sm:$0xff] %v542_v41 }
  0xd0   : > { %v446_v0 = vpop.f32.mrf.mxu2  ;;  %v486_v1 = vpop.f32.mrf.mxu3 }
  0xd1   : > { %v447_v54 = vadd.f32 %v1377_v55, %v446_v0  ;;  %v487_v29 = vadd.f32 %v1377_v55, %v486_v1  ;;  %v368_v8 = vpop.f32.mrf.mxu0  ;;  %v408_v28 = vpop.f32.mrf.mxu1 }
  0xd2   : > { %v369_v10 = vadd.f32 %v1377_v55, %v368_v8  ;;  %v409_v31 = vadd.f32 %v1377_v55, %v408_v28 }
  0xd3   : > { %v558_v2 = vadd.f32 %v447_v54, %v1131_v12  ;;  %v574_v3 = vadd.f32 %v487_v29, %v1137_v14 }
  0xd4   : > { %v527_v43 = vadd.f32 %v369_v10, %v1122_v9  ;;  %v543_v41 = vadd.f32 %v409_v31, %v1128_v11 }
  0xd5   : > { %622 = vst [vmem:[%s1385_s8 + $0x100] sm:$0xff] %v558_v2 }
  0xd6   : > { %638 = vst [vmem:[%s1385_s8 + $0x180] sm:$0xff] %v574_v3 }
  0xd7   : > { %591 = vst [vmem:[%s1385_s8 + $0x8] sm:$0xff] %v527_v43 }
  0xd8   : > { %607 = vst [vmem:[%s1385_s8 + $0x88] sm:$0xff] %v543_v41  ;;  %v448_v0 = vpop.f32.mrf.mxu2  ;;  %v488_v1 = vpop.f32.mrf.mxu3 }
  0xd9   : > { %v449_v8 = vadd.f32 %v1377_v55, %v448_v0  ;;  %v489_v12 = vadd.f32 %v1377_v55, %v488_v1  ;;  %v371_v54 = vpop.f32.mrf.mxu0  ;;  %v411_v14 = vpop.f32.mrf.mxu1 }
  0xda   : > { %v372_v9 = vadd.f32 %v1377_v55, %v371_v54  ;;  %v412_v11 = vadd.f32 %v1377_v55, %v411_v14 }
  0xdb   : > { %v559_v29 = vadd.f32 %v449_v8, %v1134_v13  ;;  %v575_v28 = vadd.f32 %v489_v12, %v1140_v15 }
  0xdc   : > { %v528_v10 = vadd.f32 %v372_v9, %v1151_v20  ;;  %v544_v31 = vadd.f32 %v412_v11, %v1157_v22 }
  0xdd   : > { %623 = vst [vmem:[%s1385_s8 + $0x108] sm:$0xff] %v559_v29 }
  0xde   : > { %639 = vst [vmem:[%s1385_s8 + $0x188] sm:$0xff] %v575_v28 }
  0xdf   : > { %592 = vst [vmem:[%s1385_s8 + $0x10] sm:$0xff] %v528_v10 }
  0xe0   : > { %608 = vst [vmem:[%s1385_s8 + $0x90] sm:$0xff] %v544_v31  ;;  %v451_v2 = vpop.f32.mrf.mxu2  ;;  %v491_v3 = vpop.f32.mrf.mxu3 }
  0xe1   : > { %v452_v43 = vadd.f32 %v1377_v55, %v451_v2  ;;  %v492_v13 = vadd.f32 %v1377_v55, %v491_v3  ;;  %v373_v41 = vpop.f32.mrf.mxu0  ;;  %v413_v15 = vpop.f32.mrf.mxu1 }
  0xe2   : > { %v374_v20 = vadd.f32 %v1377_v55, %v373_v41  ;;  %v414_v22 = vadd.f32 %v1377_v55, %v413_v15 }
  0xe3   : > { %v560_v0 = vadd.f32 %v452_v43, %v1163_v24  ;;  %v576_v1 = vadd.f32 %v492_v13, %v1169_v26 }
  0xe4   : > { %v529_v8 = vadd.f32 %v374_v20, %v1154_v21  ;;  %v545_v12 = vadd.f32 %v414_v22, %v1160_v23 }
  0xe5   : > { %624 = vst [vmem:[%s1385_s8 + $0x110] sm:$0xff] %v560_v0 }
  0xe6   : > { %640 = vst [vmem:[%s1385_s8 + $0x190] sm:$0xff] %v576_v1 }
  0xe7   : > { %593 = vst [vmem:[%s1385_s8 + $0x18] sm:$0xff] %v529_v8 }
  0xe8   : > { %609 = vst [vmem:[%s1385_s8 + $0x98] sm:$0xff] %v545_v12  ;;  %v453_v54 = vpop.f32.mrf.mxu2  ;;  %v493_v14 = vpop.f32.mrf.mxu3 }
  0xe9   : > { %v454_v9 = vadd.f32 %v1377_v55, %v453_v54  ;;  %v494_v24 = vadd.f32 %v1377_v55, %v493_v14  ;;  %v376_v11 = vpop.f32.mrf.mxu0  ;;  %v416_v26 = vpop.f32.mrf.mxu1 }
  0xea   : > { %v377_v21 = vadd.f32 %v1377_v55, %v376_v11  ;;  %v417_v23 = vadd.f32 %v1377_v55, %v416_v26 }
  0xeb   : > { %v561_v29 = vadd.f32 %v454_v9, %v1166_v25  ;;  %v577_v28 = vadd.f32 %v494_v24, %v1172_v27 }
  0xec   : > { %v530_v10 = vadd.f32 %v377_v21, %v1183_v32  ;;  %v546_v31 = vadd.f32 %v417_v23, %v1189_v34 }
  0xed   : > { %625 = vst [vmem:[%s1385_s8 + $0x118] sm:$0xff] %v561_v29 }
  0xee   : > { %641 = vst [vmem:[%s1385_s8 + $0x198] sm:$0xff] %v577_v28 }
  0xef   : > { %594 = vst [vmem:[%s1385_s8 + $0x20] sm:$0xff] %v530_v10 }
  0xf0   : > { %610 = vst [vmem:[%s1385_s8 + $0xa0] sm:$0xff] %v546_v31  ;;  %v456_v2 = vpop.f32.mrf.mxu2  ;;  %v496_v3 = vpop.f32.mrf.mxu3 }
  0xf1   : > { %v457_v43 = vadd.f32 %v1377_v55, %v456_v2  ;;  %v497_v25 = vadd.f32 %v1377_v55, %v496_v3  ;;  %v378_v13 = vpop.f32.mrf.mxu0  ;;  %v418_v27 = vpop.f32.mrf.mxu1 }
  0xf2   : > { %v379_v32 = vadd.f32 %v1377_v55, %v378_v13  ;;  %v419_v34 = vadd.f32 %v1377_v55, %v418_v27 }
  0xf3   : > { %v562_v41 = vadd.f32 %v457_v43, %v1195_v36  ;;  %v578_v15 = vadd.f32 %v497_v25, %v1201_v38 }
  0xf4   : > { %v531_v20 = vadd.f32 %v379_v32, %v1186_v33  ;;  %v547_v22 = vadd.f32 %v419_v34, %v1192_v35 }
  0xf5   : > { %626 = vst [vmem:[%s1385_s8 + $0x120] sm:$0xff] %v562_v41 }
  0xf6   : > { %642 = vst [vmem:[%s1385_s8 + $0x1a0] sm:$0xff] %v578_v15 }
  0xf7   : > { %595 = vst [vmem:[%s1385_s8 + $0x28] sm:$0xff] %v531_v20 }
  0xf8   : > { %611 = vst [vmem:[%s1385_s8 + $0xa8] sm:$0xff] %v547_v22  ;;  %v458_v0 = vpop.f32.mrf.mxu2  ;;  %v498_v1 = vpop.f32.mrf.mxu3 }
  0xf9   : > { %v459_v8 = vadd.f32 %v1377_v55, %v458_v0  ;;  %v499_v36 = vadd.f32 %v1377_v55, %v498_v1  ;;  %v381_v12 = vpop.f32.mrf.mxu0  ;;  %v421_v38 = vpop.f32.mrf.mxu1 }
  0xfa   : > { %v382_v33 = vadd.f32 %v1377_v55, %v381_v12  ;;  %v422_v35 = vadd.f32 %v1377_v55, %v421_v38 }
  0xfb   : > { %v563_v54 = vadd.f32 %v459_v8, %v1198_v37  ;;  %v579_v14 = vadd.f32 %v499_v36, %v1204_v39 }
  0xfc   : > { %v532_v9 = vadd.f32 %v382_v33, %v1215_v44  ;;  %v548_v24 = vadd.f32 %v422_v35, %v1221_v46 }
  0xfd   : > { %627 = vst [vmem:[%s1385_s8 + $0x128] sm:$0xff] %v563_v54 }
  0xfe   : > { %643 = vst [vmem:[%s1385_s8 + $0x1a8] sm:$0xff] %v579_v14 }
  0xff   : > { %596 = vst [vmem:[%s1385_s8 + $0x30] sm:$0xff] %v532_v9 }
 0x100   : > { %612 = vst [vmem:[%s1385_s8 + $0xb0] sm:$0xff] %v548_v24  ;;  %v461_v11 = vpop.f32.mrf.mxu2  ;;  %v501_v26 = vpop.f32.mrf.mxu3 }
 0x101   : > { %v462_v21 = vadd.f32 %v1377_v55, %v461_v11  ;;  %v502_v37 = vadd.f32 %v1377_v55, %v501_v26  ;;  %v383_v23 = vpop.f32.mrf.mxu0  ;;  %v423_v39 = vpop.f32.mrf.mxu1 }
 0x102   : > { %v384_v44 = vadd.f32 %v1377_v55, %v383_v23  ;;  %v424_v46 = vadd.f32 %v1377_v55, %v423_v39 }
 0x103   : > { %v564_v29 = vadd.f32 %v462_v21, %v1227_v48  ;;  %v580_v28 = vadd.f32 %v502_v37, %v1233_v50 }
 0x104   : > { %v533_v10 = vadd.f32 %v384_v44, %v1218_v45  ;;  %v549_v31 = vadd.f32 %v424_v46, %v1224_v47 }
 0x105   : > { %628 = vst [vmem:[%s1385_s8 + $0x130] sm:$0xff] %v564_v29 }
 0x106   : > { %644 = vst [vmem:[%s1385_s8 + $0x1b0] sm:$0xff] %v580_v28 }
 0x107   : > { %597 = vst [vmem:[%s1385_s8 + $0x38] sm:$0xff] %v533_v10 }
 0x108   : > { %613 = vst [vmem:[%s1385_s8 + $0xb8] sm:$0xff] %v549_v31  ;;  %v463_v2 = vpop.f32.mrf.mxu2  ;;  %v503_v3 = vpop.f32.mrf.mxu3 }
 0x109   : > { %v464_v43 = vadd.f32 %v1377_v55, %v463_v2  ;;  %v504_v48 = vadd.f32 %v1377_v55, %v503_v3  ;;  %v386_v25 = vpop.f32.mrf.mxu0  ;;  %v426_v50 = vpop.f32.mrf.mxu1 }
 0x10a   : > { %v387_v45 = vadd.f32 %v1377_v55, %v386_v25  ;;  %v427_v47 = vadd.f32 %v1377_v55, %v426_v50 }
 0x10b   : > { %v565_v13 = vadd.f32 %v464_v43, %v1230_v49  ;;  %v581_v27 = vadd.f32 %v504_v48, %v1236_v51 }
 0x10c   : > { %v534_v32 = vadd.f32 %v387_v45, %v1247_v56  ;;  %v550_v34 = vadd.f32 %v427_v47, %v1253_v58 }
 0x10d   : > { %629 = vst [vmem:[%s1385_s8 + $0x138] sm:$0xff] %v565_v13  ;;  %v1640_v13 = vld [vmem:[#allocation10_spill] sm:$0xff] }
 0x10e   : > { %645 = vst [vmem:[%s1385_s8 + $0x1b8] sm:$0xff] %v581_v27 }
 0x10f   : > { %598 = vst [vmem:[%s1385_s8 + $0x40] sm:$0xff] %v534_v32  ;;  %v1641_v32 = vld [vmem:[#allocation12_spill] sm:$0xff] }
 0x110   : > { %614 = vst [vmem:[%s1385_s8 + $0xc0] sm:$0xff] %v550_v34  ;;  %v466_v41 = vpop.f32.mrf.mxu2  ;;  %v506_v15 = vpop.f32.mrf.mxu3 }
 0x111   : > { %v467_v20 = vadd.f32 %v1377_v55, %v466_v41  ;;  %v507_v49 = vadd.f32 %v1377_v55, %v506_v15  ;;  %v388_v22 = vpop.f32.mrf.mxu0  ;;  %v428_v51 = vpop.f32.mrf.mxu1  ;;  %v1642_v41 = vld [vmem:[#allocation8_spill] sm:$0xff] }
 0x112   : > { %v389_v56 = vadd.f32 %v1377_v55, %v388_v22  ;;  %v429_v58 = vadd.f32 %v1377_v55, %v428_v51 }
 0x113   : > { %v566_v0 = vadd.f32 %v467_v20, %v1259_v60  ;;  %v582_v1 = vadd.f32 %v507_v49, %v1265_v62  ;;  %v1643_v20 = vld [vmem:[#allocation9_spill] sm:$0xff] }
 0x114   : > { %v535_v8 = vadd.f32 %v389_v56, %v1250_v57  ;;  %v551_v36 = vadd.f32 %v429_v58, %v1256_v59 }
 0x115   : > { %630 = vst [vmem:[%s1385_s8 + $0x140] sm:$0xff] %v566_v0 }
 0x116   : > { %646 = vst [vmem:[%s1385_s8 + $0x1c0] sm:$0xff] %v582_v1 }
 0x117   : > { %599 = vst [vmem:[%s1385_s8 + $0x48] sm:$0xff] %v535_v8 }
 0x118   : > { %615 = vst [vmem:[%s1385_s8 + $0xc8] sm:$0xff] %v551_v36  ;;  %v468_v12 = vpop.f32.mrf.mxu2  ;;  %v508_v38 = vpop.f32.mrf.mxu3 }
 0x119   : > { %v469_v33 = vadd.f32 %v1377_v55, %v468_v12  ;;  %v509_v60 = vadd.f32 %v1377_v55, %v508_v38  ;;  %v391_v35 = vpop.f32.mrf.mxu0  ;;  %v431_v62 = vpop.f32.mrf.mxu1  ;;  %v1644_v12 = vld [vmem:[#allocation11_spill] sm:$0xff] }
 0x11a   : > { %v392_v57 = vadd.f32 %v1377_v55, %v391_v35  ;;  %v432_v59 = vadd.f32 %v1377_v55, %v431_v62  ;;  %v1646_v35 = vld [vmem:[#allocation14_spill] sm:$0xff] }
 0x11b   : > { %v567_v54 = vadd.f32 %v469_v33, %v1262_v61  ;;  %v583_v14 = vadd.f32 %v509_v60, %v1268_v63  ;;  %v1645_v33 = vld [vmem:[#allocation13_spill] sm:$0xff] }
 0x11c   : > { %v536_v9 = vadd.f32 %v392_v57, %v1279_v4  ;;  %v552_v24 = vadd.f32 %v432_v59, %v1285_v6 }
 0x11d   : > { %631 = vst [vmem:[%s1385_s8 + $0x148] sm:$0xff] %v567_v54 }
 0x11e   : > { %647 = vst [vmem:[%s1385_s8 + $0x1c8] sm:$0xff] %v583_v14 }
 0x11f   : > { %600 = vst [vmem:[%s1385_s8 + $0x50] sm:$0xff] %v536_v9 }
 0x120   : > { %616 = vst [vmem:[%s1385_s8 + $0xd0] sm:$0xff] %v552_v24  ;;  %v471_v11 = vpop.f32.mrf.mxu2  ;;  %v511_v26 = vpop.f32.mrf.mxu3 }
 0x121   : > { %v472_v21 = vadd.f32 %v1377_v55, %v471_v11  ;;  %v512_v61 = vadd.f32 %v1377_v55, %v511_v26  ;;  %v393_v37 = vpop.f32.mrf.mxu0  ;;  %v433_v63 = vpop.f32.mrf.mxu1 }
 0x122   : > { %v394_v4 = vadd.f32 %v1377_v55, %v393_v37  ;;  %v434_v6 = vadd.f32 %v1377_v55, %v433_v63  ;;  %v1648_v63 = vld [vmem:[#allocation15_spill] sm:$0xff] }
 0x123   : > { %v568_v23 = vadd.f32 %v472_v21, %v1291_v16  ;;  %v584_v39 = vadd.f32 %v512_v61, %v1297_v18  ;;  %v1647_v21 = vld [vmem:[#allocation17_spill] sm:$0xff] }
 0x124   : > { %v537_v44 = vadd.f32 %v394_v4, %v1282_v5  ;;  %v553_v46 = vadd.f32 %v434_v6, %v1288_v7  ;;  %v1649_v6 = vld [vmem:[#allocation16_spill] sm:$0xff] }
 0x125   : > { %632 = vst [vmem:[%s1385_s8 + $0x150] sm:$0xff] %v568_v23 }
 0x126   : > { %648 = vst [vmem:[%s1385_s8 + $0x1d0] sm:$0xff] %v584_v39 }
 0x127   : > { %601 = vst [vmem:[%s1385_s8 + $0x58] sm:$0xff] %v537_v44 }
 0x128   : > { %617 = vst [vmem:[%s1385_s8 + $0xd8] sm:$0xff] %v553_v46  ;;  %v473_v29 = vpop.f32.mrf.mxu2  ;;  %v513_v28 = vpop.f32.mrf.mxu3 }
 0x129   : > { %v474_v10 = vadd.f32 %v1377_v55, %v473_v29  ;;  %v514_v16 = vadd.f32 %v1377_v55, %v513_v28  ;;  %v396_v31 = vpop.f32.mrf.mxu0  ;;  %v436_v18 = vpop.f32.mrf.mxu1  ;;  %v1650_v29 = vld [vmem:[#allocation18_spill] sm:$0xff] }
 0x12a   : > { %v397_v5 = vadd.f32 %v1377_v55, %v396_v31  ;;  %v437_v7 = vadd.f32 %v1377_v55, %v436_v18 }
 0x12b   : > { %v569_v2 = vadd.f32 %v474_v10, %v1294_v17  ;;  %v585_v3 = vadd.f32 %v514_v16, %v1300_v19 }
 0x12c   : > { %v538_v43 = vadd.f32 %v397_v5, %v1311_v40  ;;  %v554_v48 = vadd.f32 %v437_v7, %v1317_v42 }
 0x12d   : > { %633 = vst [vmem:[%s1385_s8 + $0x158] sm:$0xff] %v569_v2 }
 0x12e   : > { %649 = vst [vmem:[%s1385_s8 + $0x1d8] sm:$0xff] %v585_v3 }
 0x12f   : > { %602 = vst [vmem:[%s1385_s8 + $0x60] sm:$0xff] %v538_v43 }
 0x130   : > { %618 = vst [vmem:[%s1385_s8 + $0xe0] sm:$0xff] %v554_v48  ;;  %v476_v25 = vpop.f32.mrf.mxu2  ;;  %v516_v50 = vpop.f32.mrf.mxu3 }
 0x131   : > { %v477_v45 = vadd.f32 %v1377_v55, %v476_v25  ;;  %v517_v17 = vadd.f32 %v1377_v55, %v516_v50  ;;  %v398_v47 = vpop.f32.mrf.mxu0  ;;  %v438_v19 = vpop.f32.mrf.mxu1 }
 0x132   : > { %v399_v40 = vadd.f32 %v1377_v55, %v398_v47  ;;  %v439_v42 = vadd.f32 %v1377_v55, %v438_v19 }
 0x133   : > { %v570_v27 = vadd.f32 %v477_v45, %v1640_v13  ;;  %v586_v34 = vadd.f32 %v517_v17, %v1641_v32 }
 0x134   : > { %v539_v15 = vadd.f32 %v399_v40, %v1642_v41  ;;  %v555_v49 = vadd.f32 %v439_v42, %v1643_v20 }
 0x135   : > { %634 = vst [vmem:[%s1385_s8 + $0x160] sm:$0xff] %v570_v27 }
 0x136   : > { %650 = vst [vmem:[%s1385_s8 + $0x1e0] sm:$0xff] %v586_v34 }
 0x137   : > { %603 = vst [vmem:[%s1385_s8 + $0x68] sm:$0xff] %v539_v15 }
 0x138   : > { %619 = vst [vmem:[%s1385_s8 + $0xe8] sm:$0xff] %v555_v49  ;;  %v478_v22 = vpop.f32.mrf.mxu2  ;;  %v518_v51 = vpop.f32.mrf.mxu3 }
 0x139   : > { %v479_v56 = vadd.f32 %v1377_v55, %v478_v22  ;;  %v519_v58 = vadd.f32 %v1377_v55, %v518_v51  ;;  %v401_v0 = vpop.f32.mrf.mxu0  ;;  %v441_v1 = vpop.f32.mrf.mxu1 }
 0x13a   : > { %v402_v8 = vadd.f32 %v1377_v55, %v401_v0  ;;  %v442_v36 = vadd.f32 %v1377_v55, %v441_v1 }
 0x13b   : > { %v571_v38 = vadd.f32 %v479_v56, %v1644_v12  ;;  %v587_v60 = vadd.f32 %v519_v58, %v1645_v33 }
 0x13c   : > { %v540_v62 = vadd.f32 %v402_v8, %v1646_v35  ;;  %v556_v57 = vadd.f32 %v442_v36, %v1349_v30 }
 0x13d   : > { %635 = vst [vmem:[%s1385_s8 + $0x168] sm:$0xff] %v571_v38 }
 0x13e   : > { %651 = vst [vmem:[%s1385_s8 + $0x1e8] sm:$0xff] %v587_v60 }
 0x13f   : > { %604 = vst [vmem:[%s1385_s8 + $0x70] sm:$0xff] %v540_v62 }
 0x140   : > { %620 = vst [vmem:[%s1385_s8 + $0xf0] sm:$0xff] %v556_v57  ;;  %v481_v59 = vpop.f32.mrf.mxu2  ;;  %v521_v54 = vpop.f32.mrf.mxu3 }
 0x141   : > { %v482_v14 = vadd.f32 %v1377_v55, %v481_v59  ;;  %v522_v9 = vadd.f32 %v1377_v55, %v521_v54  ;;  %v403_v24 = vpop.f32.mrf.mxu0  ;;  %v443_v11 = vpop.f32.mrf.mxu1 }
 0x142   : > { %v404_v26 = vadd.f32 %v1377_v55, %v403_v24  ;;  %v444_v30 = vadd.f32 %v1377_v55, %v443_v11 }
 0x143   : > { %v572_v61 = vadd.f32 %v482_v14, %v1647_v21  ;;  %v588_v37 = vadd.f32 %v522_v9, %v1361_v53 }
 0x144   : > { %v541_v4 = vadd.f32 %v404_v26, %v1648_v63  ;;  %v557_v23 = vadd.f32 %v444_v30, %v1649_v6 }
 0x145   : > { %636 = vst [vmem:[%s1385_s8 + $0x170] sm:$0xff] %v572_v61 }
 0x146   : > { %652 = vst [vmem:[%s1385_s8 + $0x1f0] sm:$0xff] %v588_v37 }
 0x147   : > { %605 = vst [vmem:[%s1385_s8 + $0x78] sm:$0xff] %v541_v4 }
 0x148   : > { %621 = vst [vmem:[%s1385_s8 + $0xf8] sm:$0xff] %v557_v23  ;;  %v483_v39 = vpop.f32.mrf.mxu2  ;;  %v523_v44 = vpop.f32.mrf.mxu3 }
 0x149   : > { %v484_v53 = vadd.f32 %v1377_v55, %v483_v39  ;;  %v524_v46 = vadd.f32 %v1377_v55, %v523_v44 }
 0x14b   : > { %v573_v28 = vadd.f32 %v484_v53, %v1650_v29  ;;  %v589_v10 = vadd.f32 %v524_v46, %v1364_v52 }
 0x14d   : > { %637 = vst [vmem:[%s1385_s8 + $0x178] sm:$0xff] %v573_v28 }
 0x14e   : > { %653 = vst [vmem:[%s1385_s8 + $0x1f8] sm:$0xff] %v589_v10 }
 0x14f   : > { %931 = shalt.err (!%p928_p4)
}
 0x150   : > { %s974_s29 = smov 128   ;;  %s975_s5 = smov 8  }
 0x151   : > { %825 = dma.vmem_to_hbm [thread:$0]  (%p1046_p11), %s668_s16, 8192, %s670_s23, %s655_s17, %s974_s29, %s974_s29, %s975_s5  }
 0x152 PF: > { %s684_s7 = sand.u32 1, %s958_s12   ;;  %p1651_p7 = scmp.ge.s32.totalorder %s970_s15, 2 }
 0x153   : > { %s685_s6 = scalar_lea.sflag [#allocation4], %s684_s7 }
 0x154   : > { %p832_p5 = pnand %p1651_p7, %p1050_p12 }
 0x156   : > { %p833_p8 = pneg %p832_p5 }
 0x158   : > { %953 = dma.done.wait (%p833_p8), %s685_s6, 8192  }
 0x159   : > { %955 = vsyncadd (%p833_p8), %s685_s6, 4294959104  ;;  %p16_p10 = scmp.ge.s32.totalorder %s1021_s18, 4   ;;  %s1652_s12 = smov %s962_s13 }
 0x15a   : > { %s1653_s13 = smov %s966_s14  ;;  %s1654_s14 = smov %s1033_s21 }
 0x15b   : > { %s1655_s15 = smov %s1021_s18  ;;  %18 = sbr.rel (!%p16_p10) target bundleno = 5 (0x5), region = 77 }
 0x160   :  { %691 = vsyncpa [#allocation3], 1 }
 0x161   :  { %693 = vsyncpa [#allocation3 + $0x1], 1 }
 0x162   :  { %694 = vsyncpa [#allocation4], 1 }
 0x163   :  { %696 = vsyncpa [#allocation4 + $0x1], 1 }

</bundles_post_ra>
